<compile_context>
chip_gen: v5e
topology: v5e:2x2
jax: 0.10.0
libtpu: 0.0.40
codegen_flags: <defaults>
</compile_context>

<pallas_src>
import jax
import jax.numpy as jnp
from jax.experimental import pallas as pl
from jax.experimental.pallas import tpu as pltpu


def _round_up(n: int, m: int) -> int:
    return ((n + m - 1) // m) * m


def mlp_kernel(x_ref, w1t_ref, w2t_ref, o_ref):
    # Layer 1: x_p (B, Dp) @ w1t_p (Dp, Hp) -- weights already in (K, N) layout,
    # contracting dims ((1,),(0,)) feed the MXU with no transpose.
    h = jax.lax.dot_general(
        x_ref[...], w1t_ref[...],
        dimension_numbers=(((1,), (0,)), ((), ())),
        preferred_element_type=jnp.float32,
    )
    h = jax.nn.sigmoid(h)  # EUP/VPU, f32 throughout
    # Layer 2: h (B, Hp) @ w2t_p (Hp, O); padded hidden units (sigmoid(0)=0.5)
    # hit zero rows of w2t_p so they contribute nothing.  Sigmoid fused into
    # the single (unpadded) output store.
    o = jax.lax.dot_general(
        h, w2t_ref[...],
        dimension_numbers=(((1,), (0,)), ((), ())),
        preferred_element_type=jnp.float32,
    )
    o_ref[...] = jax.nn.sigmoid(o).astype(o_ref.dtype)


def prepare_weights(w1, w2):
    """One-time weight prep (amortized to zero cost).

    w1: (H, D_in) torch Linear .weight layout
    w2: (O, H)
    returns:
      w1t_p: (Dp, Hp) f32 -- w1.T zero-padded to lane tiles
      w2t_p: (Hp, O)  f32 -- w2.T zero-padded on H only (output stays unpadded)
    Zero padding is exact: padded D_in rows of w1t_p are zero, and padded
    hidden rows of w2t_p are zero, cancelling the sigmoid(0)=0.5 padded units.
    """
    H, D_in = w1.shape
    O, H_w = w2.shape
    assert H == H_w
    Dp = _round_up(D_in, 128)
    Hp = _round_up(H, 128)
    w1t_p = jnp.zeros((Dp, Hp), jnp.float32).at[:D_in, :H].set(
        jnp.asarray(w1, jnp.float32).T)
    w2t_p = jnp.zeros((Hp, O), jnp.float32).at[:H, :].set(
        jnp.asarray(w2, jnp.float32).T)
    return w1t_p, w2t_p


@jax.jit
def net_forward(x, w1t_p, w2t_p):
    """Pallas TPU forward for Net (biases forced to zero by the module).

    x:      (B, D_in) float
    w1t_p:  (Dp, Hp)  pre-transposed / padded fc1 weight (from prepare_weights)
    w2t_p:  (Hp, O)   pre-transposed / padded fc2 weight
    returns (B, O) float32
    """
    B, D_in = x.shape
    Dp, Hp = w1t_p.shape
    Hp2, O = w2t_p.shape
    assert Hp == Hp2

    # Single pad HLO on the (tiny) activation; fuses under jit with the
    # pallas custom-call.  Zero columns hit zero rows of w1t_p -> exact.
    x_p = jnp.pad(x.astype(jnp.float32), ((0, 0), (0, Dp - D_in)))

    # Gridless single-block kernel: whole arrays resident in VMEM, no pipeline.
    vmem = pl.BlockSpec(memory_space=pltpu.MemorySpace.VMEM)
    return pl.pallas_call(
        mlp_kernel,
        out_shape=jax.ShapeDtypeStruct((B, O), jnp.float32),
        in_specs=[vmem, vmem, vmem],
        out_specs=vmem,
    )(x_p, w1t_p, w2t_p)

    # TODO(synk): if this MLP is ever scaled to large D_in/H/O, reintroduce an
    # (M, N, K) grid with a VMEM f32 accumulator + pl.when init/finalize,
    # bf16 MXU inputs on v6e/v7x, "parallel" batch/N axes for v7x's 2 TCs, and
    # re-derive tile sizes against v7x's 64 MiB VMEM (32 MiB scoped default).


if __name__ == "__main__":
    # Shapes implied by the module: x (batch, input_size), w1 (hidden, input_size),
    # w2 (output, hidden).
    batch, input_size, hidden_size, output_size = 2, 16, 32, 8

    key = jax.random.PRNGKey(0)
    kx, kw1, kw2 = jax.random.split(key, 3)
    x = jax.random.normal(kx, (batch, input_size), dtype=jnp.float32)
    w1 = jax.random.normal(kw1, (hidden_size, input_size), dtype=jnp.float32) * 0.1
    w2 = jax.random.normal(kw2, (output_size, hidden_size), dtype=jnp.float32) * 0.1

    # One-time weight prep (hoisted out of the per-call path).
    w1t_p, w2t_p = prepare_weights(w1, w2)

    out = net_forward(x, w1t_p, w2t_p)
    out = jax.block_until_ready(out)

    # Reference check in plain JAX (same math as the PyTorch module).
    ref = jax.nn.sigmoid(jax.nn.sigmoid(x @ w1.T) @ w2.T)
    assert out.shape == (batch, output_size)
    assert jnp.allclose(out, ref, atol=1e-5, rtol=1e-5)

    print("KERNEL_OK")
</pallas_src>

<mosaic_0001>
module attributes {stable_mosaic.version = 11 : i64} {
  func.func @mlp_kernel(%arg0: memref<2x128xf32, #tpu.memory_space<vmem>>, %arg1: memref<128x128xf32, #tpu.memory_space<vmem>>, %arg2: memref<128x8xf32, #tpu.memory_space<vmem>>, %arg3: memref<2x8xf32, #tpu.memory_space<vmem>>) attributes {dimension_semantics = [], scalar_prefetch = 0 : i64, scratch_operands = 0 : i64, tpu.core_type = #tpu.core_type<tc>} {
    %c0 = arith.constant 0 : index
    %c0_0 = arith.constant 0 : index
    %0 = vector.load %arg0[%c0, %c0_0] : memref<2x128xf32, #tpu.memory_space<vmem>>, vector<2x128xf32>
    %c0_1 = arith.constant 0 : index
    %c0_2 = arith.constant 0 : index
    %1 = vector.load %arg1[%c0_1, %c0_2] : memref<128x128xf32, #tpu.memory_space<vmem>>, vector<128x128xf32>
    %cst = arith.constant dense<0.000000e+00> : vector<2x128xf32>
    %2 = tpu.matmul %0, %1, %cst {dimension_numbers = #tpu.dot_dimension_numbers<[1], [0], [0], [1], [0, 0, 1, 1], [], []>} : vector<2x128xf32>, vector<128x128xf32>, vector<2x128xf32> -> vector<2x128xf32>
    %3 = arith.negf %2 : vector<2x128xf32>
    %4 = math.exp %3 : vector<2x128xf32>
    %cst_3 = arith.constant 1.000000e+00 : f32
    %5 = vector.broadcast %cst_3 : f32 to vector<2x128xf32>
    %6 = arith.addf %5, %4 : vector<2x128xf32>
    %7 = arith.divf %5, %6 : vector<2x128xf32>
    %c0_4 = arith.constant 0 : index
    %c0_5 = arith.constant 0 : index
    %8 = vector.load %arg2[%c0_4, %c0_5] : memref<128x8xf32, #tpu.memory_space<vmem>>, vector<128x8xf32>
    %cst_6 = arith.constant dense<0.000000e+00> : vector<2x8xf32>
    %9 = tpu.matmul %7, %8, %cst_6 {dimension_numbers = #tpu.dot_dimension_numbers<[1], [0], [0], [1], [0, 0, 1, 1], [], []>} : vector<2x128xf32>, vector<128x8xf32>, vector<2x8xf32> -> vector<2x8xf32>
    %10 = arith.negf %9 : vector<2x8xf32>
    %11 = math.exp %10 : vector<2x8xf32>
    %cst_7 = arith.constant 1.000000e+00 : f32
    %12 = vector.broadcast %cst_7 : f32 to vector<2x8xf32>
    %13 = arith.addf %12, %11 : vector<2x8xf32>
    %14 = arith.divf %12, %13 : vector<2x8xf32>
    %c0_8 = arith.constant 0 : index
    %c0_9 = arith.constant 0 : index
    %15 = vector.load %arg3[%c0_8, %c0_9] : memref<2x8xf32, #tpu.memory_space<vmem>>, vector<2x8xf32>
    tpu.vector_store %arg3[%c0_8, %c0_9], %14 {strides = array<i32>} : memref<2x8xf32, #tpu.memory_space<vmem>>, vector<2x8xf32>,
    return
  }
}

</mosaic_0001>

<bundles_post_ra>
// kernel: net_forward.1
= control target key start
LH: loop header
LB: loop body
LE: loop exit
PB: predicated region body
PF: predicated region fallthrough
CT: control target
= control target key end

     0   :  { %s304_s0 = inlined_call_operand.vmem [shape: f32[2,128], index: 0, kind: input, shape index: {}]   ;;  %s305_s1 = inlined_call_operand.vmem [shape: f32[128,128], index: 1, kind: input, shape index: {}]   ;;  %s306_s2 = inlined_call_operand.vmem [shape: f32[128,8], index: 2, kind: input, shape index: {}]   ;;  %s307_s3 = inlined_call_operand.hbm [shape: f32[2,8], index: 3, kind: output, shape index: {}]  }
   0x1   :  { %v31_v0 = vld [vmem:[%s305_s1 + $0x78] sm:$0xff]  ;;  %v30_v1 = vld [vmem:[%s305_s1 + $0x70] sm:$0xff]  ;;  %v29_v2 = vld [vmem:[%s305_s1 + $0x68] sm:$0xff] }
   0x2   :  { %32 = vmatpush.msra.mxu0 %v31_v0  ;;  %v28_v3 = vld [vmem:[%s305_s1 + $0x60] sm:$0xff]  ;;  %v86_v4 = vld [vmem:[%s306_s2 + $0x78] sm:$0xff] }
   0x3   :  { %v27_v5 = vld [vmem:[%s305_s1 + $0x58] sm:$0xff]  ;;  %87 = vmatpush.msra.mxu1 %v86_v4 }
   0x4   :  { %33 = vmatpush.msra.mxu0 %v30_v1 }
   0x6   :  { %34 = vmatpush.msra.mxu0 %v29_v2 }
   0x7   :  { %8 = vsyncpa [#allocation3], 0  ;;  %v26_v6 = vld [vmem:[%s305_s1 + $0x50] sm:$0xff]  ;;  %v25_v7 = vld [vmem:[%s305_s1 + $0x48] sm:$0xff]  ;;  %s135_s25 = sshll.u32 %s307_s3, 4  ;;  %vm126_vm7 = vcmask 58368   ;;  %s136_s25 = int_to_ptr.hbm [resolvable:$true] %s135_s25 }
   0x8   :  { %35 = vmatpush.msra.mxu0 %v28_v3  ;;  %v24_v8 = vld [vmem:[%s305_s1 + $0x40] sm:$0xff]  ;;  %v23_v9 = vld [vmem:[%s305_s1 + $0x38] sm:$0xff]  ;;  %v22_v10 = vld [vmem:[%s305_s1 + $0x30] sm:$0xff] }
   0x9   :  { %v21_v11 = vld [vmem:[%s305_s1 + $0x28] sm:$0xff]  ;;  %v20_v12 = vld [vmem:[%s305_s1 + $0x20] sm:$0xff]  ;;  %v19_v13 = vld [vmem:[%s305_s1 + $0x18] sm:$0xff] }
   0xa   :  { %36 = vmatpush.msra.mxu0 %v27_v5  ;;  %v18_v14 = vld [vmem:[%s305_s1 + $0x10] sm:$0xff]  ;;  %v17_v15 = vld [vmem:[%s305_s1 + $0x8] sm:$0xff]  ;;  %v16_v16 = vld [vmem:[%s305_s1] sm:$0xff] }
   0xb   :  { %v15_v17 = vld [vmem:[%s304_s0] sm:$0x3]  ;;  %v85_v18 = vld [vmem:[%s306_s2 + $0x70] sm:$0xff]  ;;  %v84_v19 = vld [vmem:[%s306_s2 + $0x68] sm:$0xff] }
   0xc   :  { %37 = vmatpush.msra.mxu0 %v26_v6  ;;  %88 = vmatpush.msra.mxu1 %v85_v18  ;;  %v83_v20 = vld [vmem:[%s306_s2 + $0x60] sm:$0xff]  ;;  %v82_v21 = vld [vmem:[%s306_s2 + $0x58] sm:$0xff]  ;;  %v81_v22 = vld [vmem:[%s306_s2 + $0x50] sm:$0xff] }
   0xd   :  { %v80_v23 = vld [vmem:[%s306_s2 + $0x48] sm:$0xff]  ;;  %v79_v24 = vld [vmem:[%s306_s2 + $0x40] sm:$0xff]  ;;  %v78_v25 = vld [vmem:[%s306_s2 + $0x38] sm:$0xff] }
   0xe   :  { %38 = vmatpush.msra.mxu0 %v25_v7  ;;  %89 = vmatpush.msra.mxu1 %v84_v19  ;;  %v77_v26 = vld [vmem:[%s306_s2 + $0x30] sm:$0xff]  ;;  %v76_v27 = vld [vmem:[%s306_s2 + $0x28] sm:$0xff]  ;;  %v75_v28 = vld [vmem:[%s306_s2 + $0x20] sm:$0xff] }
   0xf   :  { %v74_v29 = vld [vmem:[%s306_s2 + $0x18] sm:$0xff]  ;;  %v73_v30 = vld [vmem:[%s306_s2 + $0x10] sm:$0xff]  ;;  %v72_v31 = vld [vmem:[%s306_s2 + $0x8] sm:$0xff] }
  0x10   :  { %39 = vmatpush.msra.mxu0 %v24_v8  ;;  %90 = vmatpush.msra.mxu1 %v83_v20  ;;  %v71_v32 = vld [vmem:[%s306_s2] sm:$0xff]  ;;  %s181_s2 = smov [#allocation2]  }
  0x11   :  { %s133_s22 = sshll.u32 %s181_s2, 4  ;;  %s134_s22 = int_to_ptr.vmem [resolvable:$true] %s133_s22 }
  0x12   :  { %40 = vmatpush.msra.mxu0 %v23_v9  ;;  %91 = vmatpush.msra.mxu1 %v82_v21 }
  0x14   :  { %41 = vmatpush.msra.mxu0 %v22_v10  ;;  %92 = vmatpush.msra.mxu1 %v81_v22 }
  0x16   :  { %42 = vmatpush.msra.mxu0 %v21_v11  ;;  %93 = vmatpush.msra.mxu1 %v80_v23 }
  0x18   :  { %43 = vmatpush.msra.mxu0 %v20_v12  ;;  %94 = vmatpush.msra.mxu1 %v79_v24 }
  0x1a   :  { %44 = vmatpush.msra.mxu0 %v19_v13  ;;  %95 = vmatpush.msra.mxu1 %v78_v25 }
  0x1c   :  { %45 = vmatpush.msra.mxu0 %v18_v14  ;;  %96 = vmatpush.msra.mxu1 %v77_v26 }
  0x1e   :  { %46 = vmatpush.msra.mxu0 %v17_v15  ;;  %97 = vmatpush.msra.mxu1 %v76_v27 }
  0x20   :  { %47 = vmatpush.msra.mxu0 %v16_v16  ;;  %98 = vmatpush.msra.mxu1 %v75_v28 }
  0x21   :  { %48 = vmatmul.f32.vlgmr.msra.gmra.mxu0 %v15_v17 }
  0x22   :  { %99 = vmatpush.msra.mxu1 %v74_v29 }
  0x24   :  { %100 = vmatpush.msra.mxu1 %v73_v30 }
  0x26   :  { %101 = vmatpush.msra.mxu1 %v72_v31 }
  0x28   :  { %102 = vmatpush.msra.mxu1 %v71_v32 }
  0x9e   :  { %v49_v33 = vpop.f32.mrf.mxu0 }
  0x9f   :  { %v144_v34 = vmul.f32 -1.442695, %v49_v33 }
  0xa1   :  { %147 = vpow2.f32 %v144_v34 }
  0xa7   :  { %v148_v35 = vpop.eup %147 }
  0xa8   :  { %v55_v36 = vadd.f32 1.0, %v148_v35 }
  0xaa   :  { %149 = vrcp.f32 %v55_v36  ;;  %v67_v40 = vand.u32 2147483648, %v55_v36  ;;  %v65_v42 = vand.u32 2147483647, %v55_v36  ;;  %vm61_vm1 = vweird.f32 %v55_v36 }
  0xac   :  { %v68_v44 = vor.u32 1.1754944e-38, %v67_v40  ;;  %vm66_vm3 = vcmp.eq.f32.partialorder %v65_v42, 8.507059e+37 }
  0xb0   :  { %v150_v37 = vpop.eup %149 }
  0xb1   :  { %v57_v38 = vmul.f32 %v150_v37, %v55_v36  ;;  %vm62_vm0 = vweird.f32 %v150_v37 }
  0xb2   :  { %vm63_vm2 = vmor %vm61_vm1, %vm62_vm0 }
  0xb3   :  { %v58_v39 = vsub.f32 1.0, %v57_v38 }
  0xb5   :  { %v59_v41 = vmul.f32 %v150_v37, %v58_v39 }
  0xb7   :  { %v60_v43 = vadd.f32 %v150_v37, %v59_v41 }
  0xb9   :  { %v64_v45 = vsel %vm63_vm2, %v150_v37, %v60_v43 }
  0xba   :  { %v69_v46 = vsel %vm66_vm3, %v68_v44, %v64_v45 }
  0xbb   :  { %103 = vmatmul.f32.vlgmr.msra.gmra.mxu1 %v69_v46 }
 0x138   :  { %v104_v47 = vpop.f32.mrf.mxu1 }
 0x139   :  { %v145_v48 = vmul.f32 -1.442695, %v104_v47 }
 0x13b   :  { %151 = vpow2.f32 %v145_v48 }
 0x141   :  { %v152_v49 = vpop.eup %151 }
 0x142   :  { %v110_v50 = vadd.f32 1.0, %v152_v49 }
 0x144   :  { %153 = vrcp.f32 %v110_v50  ;;  %v122_v54 = vand.u32 2147483648, %v110_v50  ;;  %v120_v56 = vand.u32 2147483647, %v110_v50  ;;  %vm116_vm5 = vweird.f32 %v110_v50 }
 0x146   :  { %v123_v58 = vor.u32 1.1754944e-38, %v122_v54  ;;  %vm121_vm8 = vcmp.eq.f32.partialorder %v120_v56, 8.507059e+37 }
 0x14a   :  { %v154_v51 = vpop.eup %153 }
 0x14b   :  { %v112_v52 = vmul.f32 %v154_v51, %v110_v50  ;;  %vm117_vm4 = vweird.f32 %v154_v51 }
 0x14c   :  { %vm118_vm6 = vmor %vm116_vm5, %vm117_vm4 }
 0x14d   :  { %v113_v53 = vsub.f32 1.0, %v112_v52 }
 0x14f   :  { %v114_v55 = vmul.f32 %v154_v51, %v113_v53 }
 0x151   :  { %v115_v57 = vadd.f32 %v154_v51, %v114_v55 }
 0x153   :  { %v119_v59 = vsel %vm118_vm6, %v154_v51, %v115_v57 }
 0x154   :  { %v124_v60 = vsel %vm121_vm8, %v123_v58, %v119_v59 }
 0x155   :  { %127 = vst.msk [vmem:[#allocation2] sm:$0x3] %vm126_vm7, %v124_v60 }
 0x156   :  { %138 = dma.vmem_to_hbm [thread:$0]  %s134_s22, 32, %s136_s25, [#allocation3]  }
 0x157   :  { %179 = dma.done.wait [#allocation3], 32  }
 0x158   :  { %180 = vsyncadd [#allocation3], 4294967264 }
 0x159   :  { %143 = vsyncpa [#allocation3], 1 }

</bundles_post_ra>
